<compile_context>
chip_gen: v6e
topology: v6e:2x2x1
jax: 0.10.0
libtpu: 0.0.40
codegen_flags: <defaults>
</compile_context>

<pallas_src>
import math
import functools

import jax
import jax.numpy as jnp
from jax.experimental import pallas as pl
from jax.experimental.pallas import tpu as pltpu

_MIB = 1024 * 1024
# Conservative stage-2 VMEM working-set budget: leaves headroom on v7x
# (64 MiB/TC physical) and is well inside v5e / v6e's 128 MiB.
_VMEM_BUDGET = 40 * _MIB
_VMEM_LIMIT_CAP = 48 * _MIB


# ---------------------------------------------------------------------------
# Kernels
# ---------------------------------------------------------------------------
def _xw_kernel(x_ref, w_ref, xw_ref):
    # One row-tile of XW = x @ W (small matmul, lane-dense output).
    xw_ref[...] = jnp.dot(
        x_ref[...], w_ref[...], preferred_element_type=jnp.float32
    ).astype(xw_ref.dtype)


def _agg_kernel_stream(g_ref, xw_ref, b_ref, o_ref, acc_ref):
    # out_tile = sum_k G[i, k] @ XW[k] + bias   (XW k-slab streamed per step)
    k = pl.program_id(1)

    @pl.when(k == 0)
    def _():
        acc_ref[...] = jnp.zeros_like(acc_ref)

    acc_ref[...] += jnp.dot(
        g_ref[...], xw_ref[...], preferred_element_type=jnp.float32
    )

    @pl.when(k == pl.num_programs(1) - 1)
    def _():
        o_ref[...] = (acc_ref[...] + b_ref[...]).astype(o_ref.dtype)


def _make_agg_kernel_resident(tk):
    # XW is fully resident in VMEM (constant index_map -> DMA'd once);
    # slice the k-slab in-kernel.
    def kernel(g_ref, xw_ref, b_ref, o_ref, acc_ref):
        k = pl.program_id(1)

        @pl.when(k == 0)
        def _():
            acc_ref[...] = jnp.zeros_like(acc_ref)

        start = pl.multiple_of(k * tk, tk)
        xw_slab = xw_ref[pl.ds(start, tk), :]
        acc_ref[...] += jnp.dot(
            g_ref[...], xw_slab, preferred_element_type=jnp.float32
        )

        @pl.when(k == pl.num_programs(1) - 1)
        def _():
            o_ref[...] = (acc_ref[...] + b_ref[...]).astype(o_ref.dtype)

    return kernel


# ---------------------------------------------------------------------------
# Wrapper
# ---------------------------------------------------------------------------
def _round_up(v, m):
    return ((v + m - 1) // m) * m


def _pick_tile(n, limit):
    """Largest multiple of 128 that divides n and is <= limit (min 128)."""
    limit = min(limit, n)
    t = (limit // 128) * 128
    while t > 128 and n % t != 0:
        t -= 128
    return max(t, 128)


@functools.partial(jax.jit, static_argnames=("row_tile", "k_tile", "use_bf16"))
def gcn_conv(x, edge_index, weight, bias=None, *, row_tile=1024, k_tile=2048,
             use_bf16=False):
    """out = edge_index @ (x @ weight) + bias  (dense GCN propagation)."""
    N, in_ft = x.shape
    out_ft = weight.shape[1]
    assert edge_index.shape == (N, N)

    out_dtype = x.dtype
    stream_dtype = jnp.bfloat16 if use_bf16 else out_dtype
    s_size = jnp.dtype(stream_dtype).itemsize
    o_size = jnp.dtype(out_dtype).itemsize
    x_size = jnp.dtype(x.dtype).itemsize
    w_size = jnp.dtype(weight.dtype).itemsize

    # Pad feature/out dims to lane-dense multiples of 128 and N to 128.
    out_p = _round_up(out_ft, 128)
    n_p = _round_up(N, 128)

    # Parameters (small) padded to lane-dense widths.
    w_p = jnp.zeros((in_ft, out_p), dtype=weight.dtype).at[:, :out_ft].set(weight)
    b_p = jnp.zeros((1, out_p), dtype=jnp.float32)
    if bias is not None:
        b_p = b_p.at[0, :out_ft].set(bias.astype(jnp.float32))

    x_p = x if n_p == N else jnp.zeros((n_p, in_ft), dtype=x.dtype).at[:N].set(x)

    # Explicit float cast so integer adjacencies never hit the MXU's (missing
    # on v7x / slow elsewhere) integer path.
    g = edge_index.astype(stream_dtype)
    # TODO(synk): for N % 128 != 0 this materializes a padded copy of G (an
    # extra full N^2 HBM round-trip); handle the ragged tail in-kernel instead.
    g_p = g if n_p == N else (
        jnp.zeros((n_p, n_p), dtype=stream_dtype).at[:N, :N].set(g)
    )

    # ---- Tile selection (VMEM-budget driven) --------------------------------
    tm_limit = row_tile
    if n_p >= 256:
        # >=2 row tiles so the "parallel" axis feeds both v7x TensorCores.
        tm_limit = min(tm_limit, n_p // 2)
    tm = _pick_tile(n_p, tm_limit)
    tk = _pick_tile(n_p, k_tile)

    def stage2_vmem(tm_, tk_, resident):
        g_b = 2 * tm_ * tk_ * s_size                       # G double-buffer
        xw_b = 2 * (n_p if resident else tk_) * out_p * s_size
        acc_b = tm_ * out_p * 4                            # f32 accumulator
        out_b = 2 * tm_ * out_p * o_size                   # out double-buffer
        bias_b = 8 * out_p * 4
        return g_b + xw_b + acc_b + out_b + bias_b

    resident_xw = stage2_vmem(tm, tk, True) <= _VMEM_BUDGET
    if not resident_xw:
        # Streamed XW: shrink tiles until the working set fits the budget.
        while stage2_vmem(tm, tk, False) > _VMEM_BUDGET:
            if tk > 128 and tk >= tm:
                tk = _pick_tile(n_p, tk // 2)
            elif tm > 128:
                tm = _pick_tile(n_p, tm // 2)
            else:
                break

    # ---- Stage 1: XW = x @ W (tiny vs. the aggregation matmul) -------------
    def stage1_vmem(tm_):
        return (2 * tm_ * in_ft * x_size + 2 * in_ft * out_p * w_size
                + 2 * tm_ * out_p * s_size)

    tm1 = tm
    while stage1_vmem(tm1) > _VMEM_BUDGET and tm1 > 128:
        tm1 = _pick_tile(n_p, tm1 // 2)
    vmem1 = min(max(32 * _MIB, stage1_vmem(tm1) + 4 * _MIB), _VMEM_LIMIT_CAP)

    xw = pl.pallas_call(
        _xw_kernel,
        out_shape=jax.ShapeDtypeStruct((n_p, out_p), stream_dtype),
        grid_spec=pltpu.PrefetchScalarGridSpec(
            num_scalar_prefetch=0,
            grid=(n_p // tm1,),
            in_specs=[
                pl.BlockSpec((tm1, in_ft), lambda i: (i, 0)),      # x row tile
                pl.BlockSpec((in_ft, out_p), lambda i: (0, 0)),    # W (resident)
            ],
            out_specs=pl.BlockSpec((tm1, out_p), lambda i: (i, 0)),
        ),
        compiler_params=pltpu.CompilerParams(
            dimension_semantics=("parallel",),
            vmem_limit_bytes=vmem1,
        ),
        cost_estimate=pl.CostEstimate(
            flops=2 * n_p * in_ft * out_p,
            transcendentals=0,
            bytes_accessed=(n_p * in_ft * x_size + in_ft * out_p * w_size
                            + n_p * out_p * s_size),
        ),
    )(x_p, w_p)

    # ---- Stage 2: out = G @ XW + bias (k-tiled, row axis parallel) ---------
    n_row_tiles = n_p // tm
    n_k_tiles = n_p // tk
    ws2 = stage2_vmem(tm, tk, resident_xw)
    vmem2 = min(max(32 * _MIB, ws2 + 4 * _MIB), _VMEM_LIMIT_CAP)

    if resident_xw:
        agg_kernel = _make_agg_kernel_resident(tk)
        xw_spec = pl.BlockSpec((n_p, out_p), lambda i, k: (0, 0))   # DMA'd once
        xw_bytes = n_p * out_p * s_size
    else:
        agg_kernel = _agg_kernel_stream
        xw_spec = pl.BlockSpec((tk, out_p), lambda i, k: (k, 0))
        xw_bytes = n_row_tiles * n_p * out_p * s_size               # re-read/row tile

    out_arr = pl.pallas_call(
        agg_kernel,
        out_shape=jax.ShapeDtypeStruct((n_p, out_p), out_dtype),
        grid_spec=pltpu.PrefetchScalarGridSpec(
            num_scalar_prefetch=0,
            grid=(n_row_tiles, n_k_tiles),
            in_specs=[
                pl.BlockSpec((tm, tk), lambda i, k: (i, k)),        # G tile
                xw_spec,                                            # XW
                pl.BlockSpec((1, out_p), lambda i, k: (0, 0)),      # bias
            ],
            out_specs=pl.BlockSpec((tm, out_p), lambda i, k: (i, 0)),
            scratch_shapes=[pltpu.VMEM((tm, out_p), jnp.float32)],  # f32 acc
        ),
        compiler_params=pltpu.CompilerParams(
            dimension_semantics=("parallel", "arbitrary"),
            vmem_limit_bytes=vmem2,
        ),
        cost_estimate=pl.CostEstimate(
            flops=2 * n_p * n_p * out_p,
            transcendentals=0,
            bytes_accessed=(n_p * n_p * s_size + xw_bytes
                            + out_p * 4 + n_p * out_p * o_size),
        ),
    )(g_p, xw, b_p)

    return out_arr[:N, :out_ft]


# ---------------------------------------------------------------------------
# Init + self-test
# ---------------------------------------------------------------------------
def _xavier_uniform(key, shape, dtype=jnp.float32):
    fan_in, fan_out = shape
    bound = math.sqrt(6.0 / (fan_in + fan_out))
    return jax.random.uniform(key, shape, dtype=dtype, minval=-bound, maxval=bound)


def _check(key, N, in_ft, out_ft):
    kx, kg, kw = jax.random.split(key, 3)
    x = jax.random.normal(kx, (N, in_ft), dtype=jnp.float32)
    adj = jax.random.normal(kg, (N, N), dtype=jnp.float32)
    weight = _xavier_uniform(kw, (in_ft, out_ft))        # xavier_uniform_ init
    bias = jnp.zeros((out_ft,), dtype=jnp.float32)       # torch.zeros(out_ft)

    out = jax.block_until_ready(gcn_conv(x, adj, weight, bias))
    ref = adj @ (x @ weight) + bias[None, :]
    assert out.shape == (N, out_ft)
    assert jnp.allclose(out, ref, atol=1e-4, rtol=1e-4), "mismatch vs reference"


if __name__ == "__main__":
    key = jax.random.PRNGKey(0)
    k1, k2 = jax.random.split(key)

    # Small deterministic examples consistent with GCNConv1.forward:
    #   x: (N, in_ft) node features, edge_index: dense (N, N) adjacency.
    _check(k1, N=128, in_ft=64, out_ft=32)    # aligned fast path
    _check(k2, N=200, in_ft=48, out_ft=40)    # unaligned (pad) path

    print("KERNEL_OK")
</pallas_src>

<mosaic_0001>
module attributes {stable_mosaic.version = 11 : i64} {
  func.func @_xw_kernel(%arg0: i32, %arg1: memref<128x64xf32, #tpu.memory_space<vmem>>, %arg2: memref<64x128xf32, #tpu.memory_space<vmem>>, %arg3: memref<128x128xf32, #tpu.memory_space<vmem>>) attributes {dimension_semantics = [#tpu.dimension_semantics<parallel>], iteration_bounds = array<i64: 1>, scalar_prefetch = 0 : i64, scratch_operands = 0 : i64, tpu.core_type = #tpu.core_type<tc>, window_params = [{transform_indices = @transform_0, window_bounds = array<i64: 128, 64>}, {pipeline_mode = #tpu.pipeline_mode<synchronous>, transform_indices = @transform_1, window_bounds = array<i64: 64, 128>}, {transform_indices = @transform_2, window_bounds = array<i64: 128, 128>}]} {
    %c0 = arith.constant 0 : index
    %c0_0 = arith.constant 0 : index
    %0 = vector.load %arg1[%c0, %c0_0] : memref<128x64xf32, #tpu.memory_space<vmem>>, vector<128x64xf32>
    %c0_1 = arith.constant 0 : index
    %c0_2 = arith.constant 0 : index
    %1 = vector.load %arg2[%c0_1, %c0_2] : memref<64x128xf32, #tpu.memory_space<vmem>>, vector<64x128xf32>
    %cst = arith.constant dense<0.000000e+00> : vector<128x128xf32>
    %2 = tpu.matmul %0, %1, %cst {dimension_numbers = #tpu.dot_dimension_numbers<[1], [0], [0], [1], [0, 0, 1, 1], [], []>} : vector<128x64xf32>, vector<64x128xf32>, vector<128x128xf32> -> vector<128x128xf32>
    %c0_3 = arith.constant 0 : index
    %c0_4 = arith.constant 0 : index
    %3 = vector.load %arg3[%c0_3, %c0_4] : memref<128x128xf32, #tpu.memory_space<vmem>>, vector<128x128xf32>
    tpu.vector_store %arg3[%c0_3, %c0_4], %2 {strides = array<i32>} : memref<128x128xf32, #tpu.memory_space<vmem>>, vector<128x128xf32>,
    return
  }
  func.func @transform_0(%arg0: i32) -> (i32, i32) {
    %c0_i32 = arith.constant 0 : i32
    %c0_i32_0 = arith.constant 0 : i32
    return %arg0, %c0_i32 : i32, i32
  }
  func.func @transform_1(%arg0: i32) -> (i32, i32) {
    %c0_i32 = arith.constant 0 : i32
    %c0_i32_0 = arith.constant 0 : i32
    %c0_i32_1 = arith.constant 0 : i32
    return %c0_i32, %c0_i32_0 : i32, i32
  }
  func.func @transform_2(%arg0: i32) -> (i32, i32) {
    %c0_i32 = arith.constant 0 : i32
    %c0_i32_0 = arith.constant 0 : i32
    return %arg0, %c0_i32 : i32, i32
  }
}

module attributes {stable_mosaic.version = 11 : i64} {
  func.func @kernel(%arg0: i32, %arg1: i32, %arg2: memref<128x128xf32, #tpu.memory_space<vmem>>, %arg3: memref<128x128xf32, #tpu.memory_space<vmem>>, %arg4: memref<1x128xf32, #tpu.memory_space<vmem>>, %arg5: memref<128x128xf32, #tpu.memory_space<vmem>>, %arg6: memref<128x128xf32, #tpu.memory_space<vmem>>) attributes {dimension_semantics = [#tpu.dimension_semantics<parallel>, #tpu.dimension_semantics<arbitrary>], iteration_bounds = array<i64: 1, 1>, scalar_prefetch = 0 : i64, scratch_operands = 1 : i64, tpu.core_type = #tpu.core_type<tc>, window_params = [{transform_indices = @transform_0, window_bounds = array<i64: 128, 128>}, {pipeline_mode = #tpu.pipeline_mode<synchronous>, transform_indices = @transform_1, window_bounds = array<i64: 128, 128>}, {pipeline_mode = #tpu.pipeline_mode<synchronous>, transform_indices = @transform_2, window_bounds = array<i64: 1, 128>}, {transform_indices = @transform_3, window_bounds = array<i64: 128, 128>}]} {
    %c0_i32 = arith.constant 0 : i32
    %0 = arith.cmpi eq, %arg1, %c0_i32 : i32
    %1 = arith.extui %0 : i1 to i32
    %c0_i32_0 = arith.constant 0 : i32
    %2 = arith.cmpi ne, %1, %c0_i32_0 : i32
    scf.if %2 {
      %cst_9 = arith.constant 0.000000e+00 : f32
      %15 = vector.broadcast %cst_9 : f32 to vector<128x128xf32>
      %c0_10 = arith.constant 0 : index
      %c0_11 = arith.constant 0 : index
      %16 = vector.load %arg6[%c0_10, %c0_11] : memref<128x128xf32, #tpu.memory_space<vmem>>, vector<128x128xf32>
      tpu.vector_store %arg6[%c0_10, %c0_11], %15 {strides = array<i32>} : memref<128x128xf32, #tpu.memory_space<vmem>>, vector<128x128xf32>,
    } else {
    }
    %c128_i32 = arith.constant 128 : i32
    %3 = arith.muli %arg1, %c128_i32 : i32
    %4 = tpu.assume_multiple %3, 128 : i32
    %5 = arith.index_cast %4 : i32 to index
    %c0 = arith.constant 0 : index
    %6 = vector.load %arg3[%5, %c0] : memref<128x128xf32, #tpu.memory_space<vmem>>, vector<128x128xf32>
    %c0_1 = arith.constant 0 : index
    %c0_2 = arith.constant 0 : index
    %7 = vector.load %arg6[%c0_1, %c0_2] : memref<128x128xf32, #tpu.memory_space<vmem>>, vector<128x128xf32>
    %c0_3 = arith.constant 0 : index
    %c0_4 = arith.constant 0 : index
    %8 = vector.load %arg2[%c0_3, %c0_4] : memref<128x128xf32, #tpu.memory_space<vmem>>, vector<128x128xf32>
    %cst = arith.constant dense<0.000000e+00> : vector<128x128xf32>
    %9 = tpu.matmul %8, %6, %cst {dimension_numbers = #tpu.dot_dimension_numbers<[1], [0], [0], [1], [0, 0, 1, 1], [], []>} : vector<128x128xf32>, vector<128x128xf32>, vector<128x128xf32> -> vector<128x128xf32>
    %10 = arith.addf %7, %9 : vector<128x128xf32>
    %c0_5 = arith.constant 0 : index
    %c0_6 = arith.constant 0 : index
    %11 = vector.load %arg6[%c0_5, %c0_6] : memref<128x128xf32, #tpu.memory_space<vmem>>, vector<128x128xf32>
    tpu.vector_store %arg6[%c0_5, %c0_6], %10 {strides = array<i32>} : memref<128x128xf32, #tpu.memory_space<vmem>>, vector<128x128xf32>,
    %c0_i32_7 = arith.constant 0 : i32
    %12 = arith.cmpi eq, %arg1, %c0_i32_7 : i32
    %13 = arith.extui %12 : i1 to i32
    %c0_i32_8 = arith.constant 0 : i32
    %14 = arith.cmpi ne, %13, %c0_i32_8 : i32
    scf.if %14 {
      %c0_9 = arith.constant 0 : index
      %c0_10 = arith.constant 0 : index
      %15 = vector.load %arg6[%c0_9, %c0_10] : memref<128x128xf32, #tpu.memory_space<vmem>>, vector<128x128xf32>
      %c0_11 = arith.constant 0 : index
      %c0_12 = arith.constant 0 : index
      %16 = vector.load %arg4[%c0_11, %c0_12] : memref<1x128xf32, #tpu.memory_space<vmem>>, vector<1x128xf32>
      %17 = vector.broadcast %16 : vector<1x128xf32> to vector<128x128xf32>
      %18 = arith.addf %15, %17 : vector<128x128xf32>
      %c0_13 = arith.constant 0 : index
      %c0_14 = arith.constant 0 : index
      %19 = vector.load %arg5[%c0_13, %c0_14] : memref<128x128xf32, #tpu.memory_space<vmem>>, vector<128x128xf32>
      tpu.vector_store %arg5[%c0_13, %c0_14], %18 {strides = array<i32>} : memref<128x128xf32, #tpu.memory_space<vmem>>, vector<128x128xf32>,
    } else {
    }
    return
  }
  func.func @transform_0(%arg0: i32, %arg1: i32) -> (i32, i32) {
    %c0_i32 = arith.constant 0 : i32
    return %arg0, %arg1 : i32, i32
  }
  func.func @transform_1(%arg0: i32, %arg1: i32) -> (i32, i32) {
    %c0_i32 = arith.constant 0 : i32
    %c0_i32_0 = arith.constant 0 : i32
    %c0_i32_1 = arith.constant 0 : i32
    return %c0_i32, %c0_i32_0 : i32, i32
  }
  func.func @transform_2(%arg0: i32, %arg1: i32) -> (i32, i32) {
    %c0_i32 = arith.constant 0 : i32
    %c0_i32_0 = arith.constant 0 : i32
    %c0_i32_1 = arith.constant 0 : i32
    return %c0_i32, %c0_i32_0 : i32, i32
  }
  func.func @transform_3(%arg0: i32, %arg1: i32) -> (i32, i32) {
    %c0_i32 = arith.constant 0 : i32
    %c0_i32_0 = arith.constant 0 : i32
    return %arg0, %c0_i32 : i32, i32
  }
}

</mosaic_0001>

<bundles_post_ra>
// kernel: gcn_conv.3
= control target key start
LH: loop header
LB: loop body
LE: loop exit
PB: predicated region body
PF: predicated region fallthrough
CT: control target
= control target key end

     0   :  { %s611_s1 = inlined_call_operand.vmem [shape: f32[128,128], index: 1, kind: input, shape index: {}]   ;;  %s612_s0 = inlined_call_operand.vmem [shape: f32[128,128], index: 0, kind: input, shape index: {}]   ;;  %s613_s2 = inlined_call_operand.vmem [shape: f32[1,128], index: 2, kind: input, shape index: {}]   ;;  %s614_s3 = inlined_call_operand.vmem [shape: f32[128,128], index: 3, kind: output, shape index: {}]  }
   0x1   :  { %v51_v0 = vld [vmem:[%s611_s1 + $0x78] sm:$0xff]  ;;  %v50_v1 = vld [vmem:[%s611_s1 + $0x70] sm:$0xff]  ;;  %v49_v2 = vld [vmem:[%s611_s1 + $0x68] sm:$0xff] }
   0x2   :  { %356 = vmatprep.subr.mxu0 %v51_v0  ;;  %412 = vmatprep.subr.mxu1 %v51_v0  ;;  %v48_v3 = vld [vmem:[%s611_s1 + $0x60] sm:$0xff]  ;;  %v47_v4 = vld [vmem:[%s611_s1 + $0x58] sm:$0xff]  ;;  %v46_v5 = vld [vmem:[%s611_s1 + $0x50] sm:$0xff] }
   0x3   :  { %357 = vmatpush3.msra.mxu0 %v51_v0  ;;  %428 = vmatpush3.msra.mxu1 %v51_v0  ;;  %v45_v6 = vld [vmem:[%s611_s1 + $0x48] sm:$0xff]  ;;  %v44_v7 = vld [vmem:[%s611_s1 + $0x40] sm:$0xff]  ;;  %v43_v8 = vld [vmem:[%s611_s1 + $0x38] sm:$0xff] }
   0x4   :  { %358 = vmatprep.subr.mxu0 %v50_v1  ;;  %413 = vmatprep.subr.mxu1 %v50_v1  ;;  %v42_v9 = vld [vmem:[%s611_s1 + $0x30] sm:$0xff]  ;;  %v41_v10 = vld [vmem:[%s611_s1 + $0x28] sm:$0xff]  ;;  %v40_v11 = vld [vmem:[%s611_s1 + $0x20] sm:$0xff] }
   0x5   :  { %359 = vmatpush3.msra.mxu0 %v50_v1  ;;  %429 = vmatpush3.msra.mxu1 %v50_v1  ;;  %v39_v12 = vld [vmem:[%s611_s1 + $0x18] sm:$0xff]  ;;  %v38_v13 = vld [vmem:[%s611_s1 + $0x10] sm:$0xff]  ;;  %v37_v14 = vld [vmem:[%s611_s1 + $0x8] sm:$0xff] }
   0x6   :  { %360 = vmatprep.subr.mxu0 %v49_v2  ;;  %414 = vmatprep.subr.mxu1 %v49_v2  ;;  %v36_v15 = vld [vmem:[%s611_s1] sm:$0xff]  ;;  %v69_v18 = vld [vmem:[%s612_s0 + $0x8] sm:$0xff]  ;;  %v70_v20 = vld [vmem:[%s612_s0 + $0x10] sm:$0xff] }
   0x7   :  { %361 = vmatpush3.msra.mxu0 %v49_v2  ;;  %430 = vmatpush3.msra.mxu1 %v49_v2  ;;  %v68_v16 = vld [vmem:[%s612_s0] sm:$0xff]  ;;  %v77_v19 = vld [vmem:[%s612_s0 + $0x48] sm:$0xff]  ;;  %v78_v21 = vld [vmem:[%s612_s0 + $0x50] sm:$0xff] }
   0x8   :  { %362 = vmatprep.subr.mxu0 %v48_v3  ;;  %415 = vmatprep.subr.mxu1 %v48_v3  ;;  %v76_v17 = vld [vmem:[%s612_s0 + $0x40] sm:$0xff]  ;;  %v71_v22 = vld [vmem:[%s612_s0 + $0x18] sm:$0xff]  ;;  %v73_v26 = vld [vmem:[%s612_s0 + $0x28] sm:$0xff] }
   0x9   :  { %363 = vmatpush3.msra.mxu0 %v48_v3  ;;  %431 = vmatpush3.msra.mxu1 %v48_v3  ;;  %v79_v23 = vld [vmem:[%s612_s0 + $0x58] sm:$0xff]  ;;  %v72_v24 = vld [vmem:[%s612_s0 + $0x20] sm:$0xff]  ;;  %v81_v27 = vld [vmem:[%s612_s0 + $0x68] sm:$0xff] }
   0xa   :  { %364 = vmatprep.subr.mxu0 %v47_v4  ;;  %416 = vmatprep.subr.mxu1 %v47_v4  ;;  %v80_v25 = vld [vmem:[%s612_s0 + $0x60] sm:$0xff]  ;;  %v74_v28 = vld [vmem:[%s612_s0 + $0x30] sm:$0xff]  ;;  %v75_v30 = vld [vmem:[%s612_s0 + $0x38] sm:$0xff] }
   0xb   :  { %365 = vmatpush3.msra.mxu0 %v47_v4  ;;  %432 = vmatpush3.msra.mxu1 %v47_v4  ;;  %v82_v29 = vld [vmem:[%s612_s0 + $0x70] sm:$0xff]  ;;  %v83_v31 = vld [vmem:[%s612_s0 + $0x78] sm:$0xff]  ;;  %v323_v32 = vld [vmem:[%s613_s2] ss:$0 sm:$0xff] }
   0xc   :  { %366 = vmatprep.subr.mxu0 %v46_v5  ;;  %417 = vmatprep.subr.mxu1 %v46_v5 }
   0xd   :  { %367 = vmatpush3.msra.mxu0 %v46_v5  ;;  %433 = vmatpush3.msra.mxu1 %v46_v5 }
   0xe   :  { %368 = vmatprep.subr.mxu0 %v45_v6  ;;  %418 = vmatprep.subr.mxu1 %v45_v6 }
   0xf   :  { %369 = vmatpush3.msra.mxu0 %v45_v6  ;;  %434 = vmatpush3.msra.mxu1 %v45_v6 }
  0x10   :  { %370 = vmatprep.subr.mxu0 %v44_v7  ;;  %419 = vmatprep.subr.mxu1 %v44_v7 }
  0x11   :  { %371 = vmatpush3.msra.mxu0 %v44_v7  ;;  %435 = vmatpush3.msra.mxu1 %v44_v7 }
  0x12   :  { %372 = vmatprep.subr.mxu0 %v43_v8  ;;  %420 = vmatprep.subr.mxu1 %v43_v8 }
  0x13   :  { %373 = vmatpush3.msra.mxu0 %v43_v8  ;;  %436 = vmatpush3.msra.mxu1 %v43_v8 }
  0x14   :  { %374 = vmatprep.subr.mxu0 %v42_v9  ;;  %421 = vmatprep.subr.mxu1 %v42_v9 }
  0x15   :  { %375 = vmatpush3.msra.mxu0 %v42_v9  ;;  %437 = vmatpush3.msra.mxu1 %v42_v9 }
  0x16   :  { %376 = vmatprep.subr.mxu0 %v41_v10  ;;  %422 = vmatprep.subr.mxu1 %v41_v10 }
  0x17   :  { %377 = vmatpush3.msra.mxu0 %v41_v10  ;;  %438 = vmatpush3.msra.mxu1 %v41_v10 }
  0x18   :  { %378 = vmatprep.subr.mxu0 %v40_v11  ;;  %423 = vmatprep.subr.mxu1 %v40_v11 }
  0x19   :  { %379 = vmatpush3.msra.mxu0 %v40_v11  ;;  %439 = vmatpush3.msra.mxu1 %v40_v11 }
  0x1a   :  { %380 = vmatprep.subr.mxu0 %v39_v12  ;;  %424 = vmatprep.subr.mxu1 %v39_v12 }
  0x1b   :  { %381 = vmatpush3.msra.mxu0 %v39_v12  ;;  %440 = vmatpush3.msra.mxu1 %v39_v12 }
  0x1c   :  { %382 = vmatprep.subr.mxu0 %v38_v13  ;;  %425 = vmatprep.subr.mxu1 %v38_v13 }
  0x1d   :  { %383 = vmatpush3.msra.mxu0 %v38_v13  ;;  %441 = vmatpush3.msra.mxu1 %v38_v13 }
  0x1e   :  { %384 = vmatprep.subr.mxu0 %v37_v14  ;;  %426 = vmatprep.subr.mxu1 %v37_v14 }
  0x1f   :  { %385 = vmatpush3.msra.mxu0 %v37_v14  ;;  %442 = vmatpush3.msra.mxu1 %v37_v14 }
  0x20   :  { %386 = vmatprep.subr.mxu0 %v36_v15  ;;  %427 = vmatprep.subr.mxu1 %v36_v15 }
  0x21   :  { %387 = vmatpush3.msra.mxu0 %v36_v15  ;;  %443 = vmatpush3.msra.mxu1 %v36_v15 }
  0x22   :  { %388 = vmatprep.mubr.f32.mxu0 %v68_v16  ;;  %400 = vmatprep.mubr.f32.mxu1 %v76_v17 }
  0x23   :  { %389 = vmatmul.mubr.f32.vlgmr.msra.gmra.mxu0 %v69_v18  ;;  %401 = vmatmul.mubr.f32.vlgmr.msra.gmra.mxu1 %v77_v19 }
  0x24   :  { %391 = vmatprep.mubr.f32.mxu0 %v70_v20  ;;  %403 = vmatprep.mubr.f32.mxu1 %v78_v21 }
  0x27   :  { %392 = vmatmul.mubr.f32.gmra.mxu0 %v71_v22  ;;  %404 = vmatmul.mubr.f32.gmra.mxu1 %v79_v23 }
  0x28   :  { %394 = vmatprep.mubr.f32.mxu0 %v72_v24  ;;  %406 = vmatprep.mubr.f32.mxu1 %v80_v25 }
  0x2b   :  { %395 = vmatmul.mubr.f32.gmra.mxu0 %v73_v26  ;;  %407 = vmatmul.mubr.f32.gmra.mxu1 %v81_v27 }
  0x2c   :  { %397 = vmatprep.mubr.f32.mxu0 %v74_v28  ;;  %409 = vmatprep.mubr.f32.mxu1 %v82_v29 }
  0x2f   :  { %398 = vmatmul.mubr.f32.gmra.mxu0 %v75_v30  ;;  %410 = vmatmul.mubr.f32.gmra.mxu1 %v83_v31 }
  0xe3   :  { %v390_v33 = vpop.f32.mrf.mxu0  ;;  %v402_v34 = vpop.f32.mrf.mxu1 }
  0xe4   :  { %v288_v35 = vadd.f32 %v390_v33, %v323_v32  ;;  %v296_v36 = vadd.f32 %v402_v34, %v323_v32 }
  0xe5   :  { %v150_v37 = vpop.f32.mrf.mxu0  ;;  %v190_v38 = vpop.f32.mrf.mxu1 }
  0xe6   :  { %304 = vst [vmem:[%s614_s3 + $0x8] sm:$0xff] %v288_v35  ;;  %312 = vst [vmem:[%s614_s3 + $0x48] sm:$0xff] %v296_v36  ;;  %v287_v39 = vadd.f32 %v323_v32, %v150_v37  ;;  %v295_v40 = vadd.f32 %v323_v32, %v190_v38 }
  0xe7   :  { %v393_v41 = vpop.f32.mrf.mxu0  ;;  %v405_v42 = vpop.f32.mrf.mxu1 }
  0xe8   :  { %303 = vst [vmem:[%s614_s3] sm:$0xff] %v287_v39  ;;  %311 = vst [vmem:[%s614_s3 + $0x40] sm:$0xff] %v295_v40  ;;  %v290_v43 = vadd.f32 %v393_v41, %v323_v32  ;;  %v298_v44 = vadd.f32 %v405_v42, %v323_v32 }
  0xe9   :  { %v160_v45 = vpop.f32.mrf.mxu0  ;;  %v200_v46 = vpop.f32.mrf.mxu1 }
  0xea   :  { %306 = vst [vmem:[%s614_s3 + $0x18] sm:$0xff] %v290_v43  ;;  %314 = vst [vmem:[%s614_s3 + $0x58] sm:$0xff] %v298_v44  ;;  %v289_v47 = vadd.f32 %v323_v32, %v160_v45  ;;  %v297_v48 = vadd.f32 %v323_v32, %v200_v46 }
  0xeb   :  { %v396_v49 = vpop.f32.mrf.mxu0  ;;  %v408_v50 = vpop.f32.mrf.mxu1 }
  0xec   :  { %305 = vst [vmem:[%s614_s3 + $0x10] sm:$0xff] %v289_v47  ;;  %313 = vst [vmem:[%s614_s3 + $0x50] sm:$0xff] %v297_v48  ;;  %v292_v51 = vadd.f32 %v396_v49, %v323_v32  ;;  %v300_v52 = vadd.f32 %v408_v50, %v323_v32 }
  0xed   :  { %v170_v53 = vpop.f32.mrf.mxu0  ;;  %v210_v54 = vpop.f32.mrf.mxu1 }
  0xee   :  { %308 = vst [vmem:[%s614_s3 + $0x28] sm:$0xff] %v292_v51  ;;  %316 = vst [vmem:[%s614_s3 + $0x68] sm:$0xff] %v300_v52  ;;  %v291_v55 = vadd.f32 %v323_v32, %v170_v53  ;;  %v299_v56 = vadd.f32 %v323_v32, %v210_v54 }
  0xef   :  { %v399_v57 = vpop.f32.mrf.mxu0  ;;  %v411_v58 = vpop.f32.mrf.mxu1 }
  0xf0   :  { %307 = vst [vmem:[%s614_s3 + $0x20] sm:$0xff] %v291_v55  ;;  %315 = vst [vmem:[%s614_s3 + $0x60] sm:$0xff] %v299_v56  ;;  %v294_v59 = vadd.f32 %v399_v57, %v323_v32  ;;  %v302_v60 = vadd.f32 %v411_v58, %v323_v32 }
  0xf1   :  { %v180_v61 = vpop.f32.mrf.mxu0  ;;  %v220_v62 = vpop.f32.mrf.mxu1 }
  0xf2   :  { %310 = vst [vmem:[%s614_s3 + $0x38] sm:$0xff] %v294_v59  ;;  %318 = vst [vmem:[%s614_s3 + $0x78] sm:$0xff] %v302_v60  ;;  %v293_v63 = vadd.f32 %v323_v32, %v180_v61  ;;  %v301_v0 = vadd.f32 %v323_v32, %v220_v62 }
  0xf4   :  { %309 = vst [vmem:[%s614_s3 + $0x30] sm:$0xff] %v293_v63  ;;  %317 = vst [vmem:[%s614_s3 + $0x70] sm:$0xff] %v301_v0 }

// kernel: gcn_conv.2
= control target key start
LH: loop header
LB: loop body
LE: loop exit
PB: predicated region body
PF: predicated region fallthrough
CT: control target
= control target key end

     0   :  { %vm35_vm0 = vcmask 523264   ;;  %s496_s1 = inlined_call_operand.vmem [shape: f32[64,128], index: 1, kind: input, shape index: {}]   ;;  %s497_s0 = inlined_call_operand.vmem [shape: f32[128,64], index: 0, kind: input, shape index: {}]   ;;  %s498_s2 = inlined_call_operand.vmem [shape: f32[128,128], index: 2, kind: output, shape index: {}]  }
   0x1   :  { %v34_v0 = vld [vmem:[%s496_s1 + $0x38] sm:$0xff]  ;;  %v33_v1 = vld [vmem:[%s496_s1 + $0x30] sm:$0xff]  ;;  %v32_v2 = vld [vmem:[%s496_s1 + $0x28] sm:$0xff] }
   0x2   :  { %289 = vmatprep.subr.mxu0 %v34_v0  ;;  %329 = vmatprep.subr.mxu1 %v34_v0  ;;  %v31_v3 = vld [vmem:[%s496_s1 + $0x20] sm:$0xff]  ;;  %v30_v4 = vld [vmem:[%s496_s1 + $0x18] sm:$0xff]  ;;  %v29_v5 = vld [vmem:[%s496_s1 + $0x10] sm:$0xff] }
   0x3   :  { %290 = vmatpush3.msra.mxu0 %v34_v0  ;;  %337 = vmatpush3.msra.mxu1 %v34_v0  ;;  %v28_v6 = vld [vmem:[%s496_s1 + $0x8] sm:$0xff]  ;;  %v27_v7 = vld [vmem:[%s496_s1] sm:$0xff]  ;;  %v13_v12 = vld [vmem:[%s497_s0 + $0x10] sm:$0xff] }
   0x4   :  { %291 = vmatprep.subr.mxu0 %v33_v1  ;;  %330 = vmatprep.subr.mxu1 %v33_v1  ;;  %v11_v8 = vld [vmem:[%s497_s0] sm:$0xff]  ;;  %v12_v10 = vld [vmem:[%s497_s0 + $0x8] sm:$0xff]  ;;  %v21_v13 = vld [vmem:[%s497_s0 + $0x50] sm:$0xff] }
   0x5   :  { %292 = vmatpush3.msra.mxu0 %v33_v1  ;;  %338 = vmatpush3.msra.mxu1 %v33_v1  ;;  %v19_v9 = vld [vmem:[%s497_s0 + $0x40] sm:$0xff]  ;;  %v20_v11 = vld [vmem:[%s497_s0 + $0x48] sm:$0xff]  ;;  %v14_v14 = vld [vmem:[%s497_s0 + $0x18] sm:$0xff] }
   0x6   :  { %293 = vmatprep.subr.mxu0 %v32_v2  ;;  %331 = vmatprep.subr.mxu1 %v32_v2  ;;  %v22_v15 = vld [vmem:[%s497_s0 + $0x58] sm:$0xff]  ;;  %v15_v16 = vld [vmem:[%s497_s0 + $0x20] sm:$0xff]  ;;  %v16_v18 = vld [vmem:[%s497_s0 + $0x28] sm:$0xff] }
   0x7   :  { %294 = vmatpush3.msra.mxu0 %v32_v2  ;;  %339 = vmatpush3.msra.mxu1 %v32_v2  ;;  %v23_v17 = vld [vmem:[%s497_s0 + $0x60] sm:$0xff]  ;;  %v24_v19 = vld [vmem:[%s497_s0 + $0x68] sm:$0xff]  ;;  %v17_v20 = vld [vmem:[%s497_s0 + $0x30] sm:$0xff] }
   0x8   :  { %295 = vmatprep.subr.mxu0 %v31_v3  ;;  %332 = vmatprep.subr.mxu1 %v31_v3  ;;  %v25_v21 = vld [vmem:[%s497_s0 + $0x70] sm:$0xff]  ;;  %v18_v22 = vld [vmem:[%s497_s0 + $0x38] sm:$0xff] }
   0x9   :  { %296 = vmatpush3.msra.mxu0 %v31_v3  ;;  %340 = vmatpush3.msra.mxu1 %v31_v3  ;;  %v26_v23 = vld [vmem:[%s497_s0 + $0x78] sm:$0xff] }
   0xa   :  { %297 = vmatprep.subr.mxu0 %v30_v4  ;;  %333 = vmatprep.subr.mxu1 %v30_v4 }
   0xb   :  { %298 = vmatpush3.msra.mxu0 %v30_v4  ;;  %341 = vmatpush3.msra.mxu1 %v30_v4 }
   0xc   :  { %299 = vmatprep.subr.mxu0 %v29_v5  ;;  %334 = vmatprep.subr.mxu1 %v29_v5 }
   0xd   :  { %300 = vmatpush3.msra.mxu0 %v29_v5  ;;  %342 = vmatpush3.msra.mxu1 %v29_v5 }
   0xe   :  { %301 = vmatprep.subr.mxu0 %v28_v6  ;;  %335 = vmatprep.subr.mxu1 %v28_v6 }
   0xf   :  { %302 = vmatpush3.msra.mxu0 %v28_v6  ;;  %343 = vmatpush3.msra.mxu1 %v28_v6 }
  0x10   :  { %303 = vmatprep.subr.mxu0 %v27_v7  ;;  %336 = vmatprep.subr.mxu1 %v27_v7 }
  0x11   :  { %304 = vmatpush3.msra.mxu0 %v27_v7  ;;  %344 = vmatpush3.msra.mxu1 %v27_v7 }
  0x12   :  { %305 = vmatprep.mubr.msk.f32.mxu0 %vm35_vm0, %v11_v8  ;;  %317 = vmatprep.mubr.msk.f32.mxu1 %vm35_vm0, %v19_v9 }
  0x13   :  { %306 = vmatmul.mubr.msk.f32.vlgmr.msra.gmra.mxu0 %vm35_vm0, %v12_v10  ;;  %318 = vmatmul.mubr.msk.f32.vlgmr.msra.gmra.mxu1 %vm35_vm0, %v20_v11 }
  0x14   :  { %308 = vmatprep.mubr.msk.f32.mxu0 %vm35_vm0, %v13_v12  ;;  %320 = vmatprep.mubr.msk.f32.mxu1 %vm35_vm0, %v21_v13 }
  0x17   :  { %309 = vmatmul.mubr.msk.f32.gmra.mxu0 %vm35_vm0, %v14_v14  ;;  %321 = vmatmul.mubr.msk.f32.gmra.mxu1 %vm35_vm0, %v22_v15 }
  0x18   :  { %311 = vmatprep.mubr.msk.f32.mxu0 %vm35_vm0, %v15_v16  ;;  %323 = vmatprep.mubr.msk.f32.mxu1 %vm35_vm0, %v23_v17 }
  0x1b   :  { %312 = vmatmul.mubr.msk.f32.gmra.mxu0 %vm35_vm0, %v16_v18  ;;  %324 = vmatmul.mubr.msk.f32.gmra.mxu1 %vm35_vm0, %v24_v19 }
  0x1c   :  { %314 = vmatprep.mubr.msk.f32.mxu0 %vm35_vm0, %v17_v20  ;;  %326 = vmatprep.mubr.msk.f32.mxu1 %vm35_vm0, %v25_v21 }
  0x1f   :  { %315 = vmatmul.mubr.msk.f32.gmra.mxu0 %vm35_vm0, %v18_v22  ;;  %327 = vmatmul.mubr.msk.f32.gmra.mxu1 %vm35_vm0, %v26_v23 }
  0xd3   :  { %v307_v24 = vpop.f32.mrf.mxu0  ;;  %v319_v25 = vpop.f32.mrf.mxu1 }
  0xd4   :  { %230 = vst [vmem:[%s498_s2 + $0x8] sm:$0xff] %v307_v24  ;;  %238 = vst [vmem:[%s498_s2 + $0x48] sm:$0xff] %v319_v25 }
  0xd5   :  { %v150_v26 = vpop.f32.mrf.mxu0  ;;  %v190_v27 = vpop.f32.mrf.mxu1 }
  0xd6   :  { %229 = vst [vmem:[%s498_s2] sm:$0xff] %v150_v26  ;;  %237 = vst [vmem:[%s498_s2 + $0x40] sm:$0xff] %v190_v27 }
  0xd7   :  { %v310_v28 = vpop.f32.mrf.mxu0  ;;  %v322_v29 = vpop.f32.mrf.mxu1 }
  0xd8   :  { %232 = vst [vmem:[%s498_s2 + $0x18] sm:$0xff] %v310_v28  ;;  %240 = vst [vmem:[%s498_s2 + $0x58] sm:$0xff] %v322_v29 }
  0xd9   :  { %v160_v30 = vpop.f32.mrf.mxu0  ;;  %v200_v31 = vpop.f32.mrf.mxu1 }
  0xda   :  { %231 = vst [vmem:[%s498_s2 + $0x10] sm:$0xff] %v160_v30  ;;  %239 = vst [vmem:[%s498_s2 + $0x50] sm:$0xff] %v200_v31 }
  0xdb   :  { %v313_v32 = vpop.f32.mrf.mxu0  ;;  %v325_v33 = vpop.f32.mrf.mxu1 }
  0xdc   :  { %234 = vst [vmem:[%s498_s2 + $0x28] sm:$0xff] %v313_v32  ;;  %242 = vst [vmem:[%s498_s2 + $0x68] sm:$0xff] %v325_v33 }
  0xdd   :  { %v170_v34 = vpop.f32.mrf.mxu0  ;;  %v210_v35 = vpop.f32.mrf.mxu1 }
  0xde   :  { %233 = vst [vmem:[%s498_s2 + $0x20] sm:$0xff] %v170_v34  ;;  %241 = vst [vmem:[%s498_s2 + $0x60] sm:$0xff] %v210_v35 }
  0xdf   :  { %v316_v36 = vpop.f32.mrf.mxu0  ;;  %v328_v37 = vpop.f32.mrf.mxu1 }
  0xe0   :  { %236 = vst [vmem:[%s498_s2 + $0x38] sm:$0xff] %v316_v36  ;;  %244 = vst [vmem:[%s498_s2 + $0x78] sm:$0xff] %v328_v37 }
  0xe1   :  { %v180_v38 = vpop.f32.mrf.mxu0  ;;  %v220_v39 = vpop.f32.mrf.mxu1 }
  0xe2   :  { %235 = vst [vmem:[%s498_s2 + $0x30] sm:$0xff] %v180_v38  ;;  %243 = vst [vmem:[%s498_s2 + $0x70] sm:$0xff] %v220_v39 }

</bundles_post_ra>
